<compile_context>
chip_gen: v6e
topology: v6e:2x2x1
jax: 0.10.0
libtpu: 0.0.40
codegen_flags: <defaults>
</compile_context>

<pallas_src>
import math
from functools import partial

import jax
import jax.numpy as jnp
from jax.experimental import pallas as pl
from jax.experimental.pallas import tpu as pltpu

MAX_LEN = 149  # matches the PyTorch module

# Per-tile byte budget for one x row-tile.  Double-buffered x-in + out
# (~4 * 4 MiB = 16 MiB) plus the slim pe tiles stays comfortably inside the
# 32 MiB default scoped VMEM on v6e/v7x and far inside v5e/v6e physical VMEM.
_TILE_BYTES_TARGET = 4 * 1024 * 1024


def build_pe_table(d_model: int, max_len: int = MAX_LEN) -> jnp.ndarray:
    """Deterministic sin/cos positional-encoding buffer, shape [max_len, 1, d_model]."""
    position = jnp.arange(max_len, dtype=jnp.float32)[:, None]            # [max_len, 1]
    div_term = jnp.exp(
        jnp.arange(0, d_model, 2, dtype=jnp.float32) * (-math.log(10000.0) / d_model)
    )                                                                      # [ceil(D/2)]
    angles = position * div_term                                           # [max_len, ceil(D/2)]
    pe = jnp.zeros((max_len, d_model), dtype=jnp.float32)
    pe = pe.at[:, 0::2].set(jnp.sin(angles))
    # Slice cos to floor(D/2) columns so odd d_model also works.
    pe = pe.at[:, 1::2].set(jnp.cos(angles)[:, : d_model // 2])
    return pe[:, None, :]                                                  # [max_len, 1, d_model]


def _pos_enc_kernel(x_ref, pe_ref, o_ref, *, batch: int):
    # x_ref/o_ref: (ts, B*D) lane-dense tiles; pe_ref: (ts, D) un-broadcast tile.
    pe_t = pe_ref[...]
    # Broadcast over batch along the lane axis inside the kernel (XLU/VPU work,
    # free filler under the memory-bound regime) instead of re-reading B copies
    # of pe from HBM.
    pe_wide = pe_t if batch == 1 else jnp.tile(pe_t, (1, batch))
    o_ref[...] = (x_ref[...] + pe_wide).astype(o_ref.dtype)


def _choose_row_tile(n_rows: int, row_bytes: int) -> int:
    """Whole array if it fits the budget, else a large multiple of 8 rows
    (sublane constraint) that fits ~_TILE_BYTES_TARGET."""
    if n_rows * row_bytes <= _TILE_BYTES_TARGET:
        return n_rows
    ts = _TILE_BYTES_TARGET // max(row_bytes, 1)
    ts = max(8, (ts // 8) * 8)
    return min(ts, n_rows)


def positional_encoding(x: jnp.ndarray, pe: jnp.ndarray) -> jnp.ndarray:
    """
    x : [S, B, D]
    pe: [max_len, 1, D] float32 buffer (only first S rows are used)
    returns x + pe[:S]  (dropout p=0.0 is identity)
    """
    S, B, D = x.shape
    assert pe.shape[0] >= S, f"seq_len {S} exceeds positional table length {pe.shape[0]}"
    assert pe.shape[2] == D

    C = B * D
    # Lane-dense 2D view of x (free reshape: trailing dims are contiguous).
    x2 = x.reshape(S, C)
    # Un-broadcast pe rows, tiny ([S, D]); batch broadcast happens in-kernel.
    pe_sd = pe[:S, 0, :].astype(x.dtype)

    row_bytes = C * jnp.dtype(x.dtype).itemsize
    ts = _choose_row_tile(S, row_bytes)
    grid = (pl.cdiv(S, ts),)

    # Last block dims equal the full array dims (C and D respectively), so the
    # (8,128) lane constraint never triggers; ts is either S or a multiple of 8.
    x_spec = pl.BlockSpec((ts, C), lambda i: (i, 0))
    pe_spec = pl.BlockSpec((ts, D), lambda i: (i, 0))

    # TODO(synk): dropout with p=0.0 is the identity; no RNG masking implemented.
    out2 = pl.pallas_call(
        partial(_pos_enc_kernel, batch=B),
        out_shape=jax.ShapeDtypeStruct((S, C), x.dtype),
        grid=grid,
        in_specs=[x_spec, pe_spec],
        out_specs=x_spec,
        compiler_params=pltpu.CompilerParams(
            dimension_semantics=("parallel",),
        ),
    )(x2, pe_sd)

    return out2.reshape(S, B, D)


if __name__ == "__main__":
    # Small shapes implied by the forward: [seq_len, batch, d_model]
    S, B, D = 8, 2, 32

    key = jax.random.PRNGKey(0)
    x = jax.random.normal(key, (S, B, D), dtype=jnp.float32)

    pe = build_pe_table(D, MAX_LEN)

    out = positional_encoding(x, pe)
    out = jax.block_until_ready(out)

    # Reference check in plain JAX (same math as the PyTorch forward).
    ref = x + pe[:S]
    assert out.shape == (S, B, D)
    assert jnp.allclose(out, ref, atol=1e-6), "mismatch vs reference"

    print("KERNEL_OK")
</pallas_src>

<mosaic_0001>
module attributes {stable_mosaic.version = 11 : i64} {
  func.func @_pos_enc_kernel(%arg0: i32, %arg1: memref<8x64xf32, #tpu.memory_space<vmem>>, %arg2: memref<8x32xf32, #tpu.memory_space<vmem>>, %arg3: memref<8x64xf32, #tpu.memory_space<vmem>>) attributes {dimension_semantics = [#tpu.dimension_semantics<parallel>], iteration_bounds = array<i64: 1>, scalar_prefetch = 0 : i64, scratch_operands = 0 : i64, tpu.core_type = #tpu.core_type<tc>, window_params = [{transform_indices = @transform_0, window_bounds = array<i64: 8, 64>}, {transform_indices = @transform_1, window_bounds = array<i64: 8, 32>}, {transform_indices = @transform_2, window_bounds = array<i64: 8, 64>}]} {
    %c0 = arith.constant 0 : index
    %c0_0 = arith.constant 0 : index
    %0 = vector.load %arg2[%c0, %c0_0] : memref<8x32xf32, #tpu.memory_space<vmem>>, vector<8x32xf32>
    %1 = tpu.concatenate %0, %0 in 1 : vector<8x32xf32>, vector<8x32xf32> -> vector<8x64xf32>
    %c0_1 = arith.constant 0 : index
    %c0_2 = arith.constant 0 : index
    %2 = vector.load %arg1[%c0_1, %c0_2] : memref<8x64xf32, #tpu.memory_space<vmem>>, vector<8x64xf32>
    %3 = arith.addf %2, %1 : vector<8x64xf32>
    %c0_3 = arith.constant 0 : index
    %c0_4 = arith.constant 0 : index
    %4 = vector.load %arg3[%c0_3, %c0_4] : memref<8x64xf32, #tpu.memory_space<vmem>>, vector<8x64xf32>
    tpu.vector_store %arg3[%c0_3, %c0_4], %3 {strides = array<i32>} : memref<8x64xf32, #tpu.memory_space<vmem>>, vector<8x64xf32>,
    return
  }
  func.func @transform_0(%arg0: i32) -> (i32, i32) {
    %c0_i32 = arith.constant 0 : i32
    %c0_i32_0 = arith.constant 0 : i32
    return %arg0, %c0_i32 : i32, i32
  }
  func.func @transform_1(%arg0: i32) -> (i32, i32) {
    %c0_i32 = arith.constant 0 : i32
    %c0_i32_0 = arith.constant 0 : i32
    return %arg0, %c0_i32 : i32, i32
  }
  func.func @transform_2(%arg0: i32) -> (i32, i32) {
    %c0_i32 = arith.constant 0 : i32
    %c0_i32_0 = arith.constant 0 : i32
    return %arg0, %c0_i32 : i32, i32
  }
}

</mosaic_0001>

<bundles_post_ra>
// kernel: tpu_custom_call.1
= control target key start
LH: loop header
LB: loop body
LE: loop exit
PB: predicated region body
PF: predicated region fallthrough
CT: control target
= control target key end

     0   :  { %7 = vsyncpa [#allocation3], 0  ;;  %s161_s0 = inlined_call_operand.hbm [shape: f32[8,64], index: 0, kind: input, shape index: {}]   ;;  %s162_s1 = inlined_call_operand.hbm [shape: f32[8,32], index: 1, kind: input, shape index: {}]   ;;  %s163_s2 = inlined_call_operand.hbm [shape: f32[8,64], index: 2, kind: output, shape index: {}]  }
   0x1   :  { %8 = vsyncpa [#allocation6], 0 }
   0x2   :  { %9 = vsyncpa [#allocation4], 0  ;;  %s133_s9 = smov [#allocation2]   ;;  %s134_s11 = smov [#allocation5]  }
   0x3   :  { %s16_s10 = sshll.u32 %s133_s9, 4  ;;  %s26_s12 = sshll.u32 %s134_s11, 4  ;;  %s17_s10 = int_to_ptr.vmem [resolvable:$true] %s16_s10  ;;  %s27_s12 = int_to_ptr.vmem [resolvable:$true] %s26_s12 }
   0x4   :  { %s75_s13 = scalar_lea.vmem %s17_s10, 128  ;;  %p80_p1 = scmp.lt.s32.totalorder %s17_s10, %s17_s10 }
   0x5   :  { %p76_p0 = scmp.ne.s32.totalorder %s17_s10, %s75_s13  ;;  %p81_p2 = scmp.lt.s32.totalorder %s75_s13, %s75_s13 }
   0x7   :  { %p82_p3 = por %p81_p2, %p80_p1 }
   0x9   :  { %p83_p4 = pnand %p82_p3, %p76_p0 }
   0xb   :  { %86 = shalt.err (!%p83_p4)
}
   0xc   :  { %19 = dma.hbm_to_vmem [thread:$0]  %s161_s0, 128, %s17_s10, [#allocation3]  }
   0xd   :  { %s95_s16 = scalar_lea.vmem %s27_s12, 128  ;;  %p100_p6 = scmp.lt.s32.totalorder %s27_s12, %s27_s12 }
   0xe   :  { %p96_p5 = scmp.ne.s32.totalorder %s27_s12, %s95_s16  ;;  %p101_p7 = scmp.lt.s32.totalorder %s95_s16, %s95_s16 }
  0x10   :  { %p102_p8 = por %p101_p7, %p100_p6 }
  0x12   :  { %p103_p9 = pnand %p102_p8, %p96_p5 }
  0x14   :  { %106 = shalt.err (!%p103_p9)
}
  0x15   :  { %29 = dma.hbm_to_vmem [thread:$0]  %s162_s1, 128, %s27_s12, [#allocation6]  }
  0x16   :  { %127 = dma.done.wait [#allocation3], 128  }
  0x17   :  { %128 = vsyncadd [#allocation3], 4294967168 }
  0x18   :  { %129 = dma.done.wait [#allocation6], 128  }
  0x19   :  { %130 = vsyncadd [#allocation6], 4294967168  ;;  %v36_v0 = vld [vmem:[#allocation5] sm:$0xff]  ;;  %s135_s19 = smov 32   ;;  %vm41_vm0 = vcmask 261120   ;;  %v43_v1 = vld [vmem:[#allocation2] sm:$0xff] }
  0x1a   :  { %38 = vrot.lane.b32.xlu0 %v36_v0, %s135_s19  ;;  %s136_s0 = smov [#allocation7]   ;;  %vm45_vm1 = vcmask 523264  }
  0x1b   :  { %s53_s20 = sshll.u32 %s136_s0, 4  ;;  %s54_s20 = int_to_ptr.vmem [resolvable:$true] %s53_s20 }
  0x1c   :  { %s107_s21 = scalar_lea.vmem %s54_s20, 128  ;;  %p112_p11 = scmp.lt.s32.totalorder %s54_s20, %s54_s20 }
  0x1d   :  { %p108_p10 = scmp.ne.s32.totalorder %s54_s20, %s107_s21  ;;  %p113_p12 = scmp.lt.s32.totalorder %s107_s21, %s107_s21 }
  0x1f   :  { %p114_p13 = por %p113_p12, %p112_p11 }
  0x21   :  { %p115_p0 = pnand %p114_p13, %p108_p10 }
  0x8c   :  { %v39_v2 = vpop.permute.xlu0 %38 }
  0x8d   :  { %v42_v3 = vsel %vm41_vm0, %v36_v0, %v39_v2 }
  0x8e   :  { %v44_v4 = vadd.f32 %v43_v1, %v42_v3 }
  0x90   :  { %46 = vst.msk [vmem:[#allocation7] sm:$0xff] %vm45_vm1, %v44_v4 }
  0x91   :  { %118 = shalt.err (!%p115_p0)
}
  0x92   :  { %56 = dma.vmem_to_hbm [thread:$0]  %s54_s20, 128, %s163_s2, [#allocation4]  }
  0x93   :  { %131 = dma.done.wait [#allocation4], 128  }
  0x94   :  { %132 = vsyncadd [#allocation4], 4294967168 }
  0x95   :  { %60 = vsyncpa [#allocation3], 1 }
  0x96   :  { %61 = vsyncpa [#allocation6], 1 }
  0x97   :  { %62 = vsyncpa [#allocation4], 1 }

</bundles_post_ra>
